<compile_context>
chip_gen: v6e
topology: v6e:2x2x1
jax: 0.10.0
libtpu: 0.0.40
codegen_flags: <defaults>
</compile_context>

<pallas_src>
import jax
import jax.numpy as jnp
from jax.experimental import pallas as pl
from jax.experimental.pallas import tpu as pltpu  # noqa: F401  (kept for TPU-specific tuning hooks)

_LANES = 128
_SUBLANES = 8
_TILE_ELEMS = _LANES * _SUBLANES  # one full (8,128) f32 vreg tile


def _alias_copy_kernel(src_ref, out_ref):
    # Whole-slab, lane-dense copy. With input_output_aliases the buffer is shared,
    # so this lowers to (at most) a trivial VMEM touch.
    out_ref[...] = src_ref[...]


def _fused_passthrough_boxes(boxes_list):
    """Route all non-empty (N_i, 4) box tensors through ONE aliased, lane-dense
    pallas_call and unpack them back into per-sample arrays."""
    results = [jnp.asarray(b) for b in boxes_list]
    nonempty = [(i, results[i]) for i in range(len(results)) if results[i].shape[0] > 0]
    if not nonempty:
        # All samples empty: zero-size arrays cannot (and need not) touch a kernel.
        return results

    # Pack every sample's rows into a single flat vector, pad to a full (8,128) tile,
    # and present it to the kernel as a lane-dense (rows, 128) slab.
    flat = jnp.concatenate([b.reshape(-1) for _, b in nonempty])
    total = flat.shape[0]
    padded = pl.cdiv(total, _TILE_ELEMS) * _TILE_ELEMS
    slab = jnp.pad(flat, (0, padded - total)).reshape(padded // _LANES, _LANES)

    out_slab = pl.pallas_call(
        _alias_copy_kernel,
        out_shape=jax.ShapeDtypeStruct(slab.shape, slab.dtype),
        # No grid: single invocation, full-array block (legal since block == array dims).
        in_specs=[pl.BlockSpec(slab.shape, lambda: (0, 0))],
        out_specs=pl.BlockSpec(slab.shape, lambda: (0, 0)),
        # Zero-cost alias: output reuses the input buffer instead of a real copy.
        input_output_aliases={0: 0},
    )(slab)

    # Unpack back to per-sample (N_i, 4) views, preserving each sample's dtype.
    out_flat = out_slab.reshape(-1)
    offset = 0
    for i, b in nonempty:
        n = b.shape[0]
        results[i] = out_flat[offset:offset + 4 * n].reshape(n, 4).astype(b.dtype)
        offset += 4 * n
    return results


def rpn_gt_forward(image_sizes, features, targets=None, training=True):
    """JAX/Pallas equivalent of rpn_gt.forward.

    Args:
      image_sizes: list of (H, W) tuples (mirrors images.image_sizes; only len() is used).
      features: dict with key '0' -> feature map (NCHW); only its dtype matters.
      targets: list of dicts each with key 'boxes' -> (N_i, 4) array (eval mode only).
      training: bool, mirrors nn.Module.training.

    Returns:
      (boxes, losses) where boxes is a list of arrays and losses is an empty dict.
    """
    losses = {}
    if training:
        feat_dtype = features["0"].dtype
        # torch.tensor([]).reshape(0, 4).to(features['0']) -> empty (0, 4) of feat dtype.
        # Zero-size arrays never touch the TPU.
        boxes = [jnp.zeros((0, 4), dtype=feat_dtype) for _ in range(len(image_sizes))]
    else:
        # Eval mode: identity pass-through of ground-truth boxes (original dtype kept),
        # fused into a single aliased Pallas call.
        boxes = _fused_passthrough_boxes([sample["boxes"] for sample in targets])
    return boxes, losses


if __name__ == "__main__":
    key = jax.random.PRNGKey(0)
    k_feat, k_b0, k_b1 = jax.random.split(key, 3)

    # Small, module-consistent shapes; third sample has zero GT boxes to exercise the bypass.
    batch = 3
    image_sizes = [(16, 16) for _ in range(batch)]
    features = {"0": jax.random.normal(k_feat, (batch, 4, 16, 16), dtype=jnp.float32)}

    targets = [
        {"boxes": jax.random.uniform(k_b0, (8, 4), dtype=jnp.float32) * 16.0},
        {"boxes": jax.random.uniform(k_b1, (16, 4), dtype=jnp.float32) * 16.0},
        {"boxes": jnp.zeros((0, 4), dtype=jnp.float32)},
    ]

    # Training-mode path: empty boxes, empty losses, no kernel launched.
    train_boxes, train_losses = rpn_gt_forward(image_sizes, features, targets=None, training=True)
    assert len(train_boxes) == batch
    for b in train_boxes:
        assert b.shape == (0, 4) and b.dtype == features["0"].dtype
    assert train_losses == {}

    # Eval-mode path: boxes pass through the single fused Pallas call unchanged.
    eval_boxes, eval_losses = rpn_gt_forward(image_sizes, features, targets=targets, training=False)
    eval_boxes = [jax.block_until_ready(b) for b in eval_boxes]
    assert eval_losses == {}
    for out, tgt in zip(eval_boxes, targets):
        assert out.shape == tgt["boxes"].shape
        assert out.dtype == tgt["boxes"].dtype
        if out.shape[0] > 0:
            assert jnp.allclose(out, tgt["boxes"])

    print("KERNEL_OK")
</pallas_src>

<mosaic_0001>
module attributes {stable_mosaic.version = 11 : i64} {
  func.func @_alias_copy_kernel(%arg0: memref<8x128xf32, #tpu.memory_space<vmem>>, %arg1: memref<8x128xf32, #tpu.memory_space<vmem>>) attributes {dimension_semantics = [], scalar_prefetch = 0 : i64, scratch_operands = 0 : i64, tpu.core_type = #tpu.core_type<tc>} {
    %c0 = arith.constant 0 : index
    %c0_0 = arith.constant 0 : index
    %0 = vector.load %arg0[%c0, %c0_0] : memref<8x128xf32, #tpu.memory_space<vmem>>, vector<8x128xf32>
    %c0_1 = arith.constant 0 : index
    %c0_2 = arith.constant 0 : index
    %1 = vector.load %arg1[%c0_1, %c0_2] : memref<8x128xf32, #tpu.memory_space<vmem>>, vector<8x128xf32>
    tpu.vector_store %arg1[%c0_1, %c0_2], %0 {strides = array<i32>} : memref<8x128xf32, #tpu.memory_space<vmem>>, vector<8x128xf32>,
    return
  }
}

</mosaic_0001>

<bundles_post_ra>
// kernel: tpu_custom_call.1
= control target key start
LH: loop header
LB: loop body
LE: loop exit
PB: predicated region body
PF: predicated region fallthrough
CT: control target
= control target key end

     0   :  { %6 = vsyncpa [#allocation3], 0  ;;  %s102_s0 = inlined_call_operand.hbm [shape: f32[8,128], index: 0, kind: input, shape index: {}, may-alias: {0,1}]   ;;  %s103_s1 = inlined_call_operand.hbm [shape: f32[8,128], index: 1, kind: output, shape index: {}, may-alias: {0,1}]  }
   0x1   :  { %7 = vsyncpa [#allocation4], 0  ;;  %s84_s6 = smov [#allocation2]  }
   0x2   :  { %s14_s7 = sshll.u32 %s84_s6, 4  ;;  %s15_s7 = int_to_ptr.vmem [resolvable:$true] %s14_s7 }
   0x3   :  { %s48_s8 = scalar_lea.vmem %s15_s7, 128  ;;  %p53_p1 = scmp.lt.s32.totalorder %s15_s7, %s15_s7 }
   0x4   :  { %p49_p0 = scmp.ne.s32.totalorder %s15_s7, %s48_s8  ;;  %p54_p2 = scmp.lt.s32.totalorder %s48_s8, %s48_s8 }
   0x6   :  { %p55_p3 = por %p54_p2, %p53_p1 }
   0x8   :  { %p56_p4 = pnand %p55_p3, %p49_p0 }
   0xa   :  { %59 = shalt.err (!%p56_p4)
}
   0xb   :  { %17 = dma.hbm_to_vmem [thread:$0]  %s102_s0, 128, %s15_s7, [#allocation3]  }
   0xc   :  { %80 = dma.done.wait [#allocation3], 128  }
   0xd   :  { %81 = vsyncadd [#allocation3], 4294967168  ;;  %s85_s11 = smov [#allocation5]   ;;  %v21_v0 = vld [vmem:[#allocation2] sm:$0xff] }
   0xe   :  { %s29_s12 = sshll.u32 %s85_s11, 4  ;;  %22 = vst [vmem:[#allocation5] sm:$0xff] %v21_v0  ;;  %s30_s12 = int_to_ptr.vmem [resolvable:$true] %s29_s12 }
   0xf   :  { %s60_s13 = scalar_lea.vmem %s30_s12, 128  ;;  %p65_p6 = scmp.lt.s32.totalorder %s30_s12, %s30_s12 }
  0x10   :  { %p61_p5 = scmp.ne.s32.totalorder %s30_s12, %s60_s13  ;;  %p66_p7 = scmp.lt.s32.totalorder %s60_s13, %s60_s13 }
  0x12   :  { %p67_p8 = por %p66_p7, %p65_p6 }
  0x14   :  { %p68_p9 = pnand %p67_p8, %p61_p5 }
  0x16   :  { %71 = shalt.err (!%p68_p9)
}
  0x17   :  { %32 = dma.vmem_to_hbm [thread:$0]  %s30_s12, 128, %s103_s1, [#allocation4]  }
  0x18   :  { %82 = dma.done.wait [#allocation4], 128  }
  0x19   :  { %83 = vsyncadd [#allocation4], 4294967168 }
  0x1a   :  { %36 = vsyncpa [#allocation3], 1 }
  0x1b   :  { %37 = vsyncpa [#allocation4], 1 }

</bundles_post_ra>
